<compile_context>
chip_gen: v5e
topology: v5e:2x2
jax: 0.10.0
libtpu: 0.0.40
codegen_flags: <defaults>
</compile_context>

<pallas_src>
import functools

import jax
import jax.numpy as jnp
from jax.experimental import pallas as pl
from jax.experimental.pallas import tpu as pltpu

BN_EPS = 1e-5


def _round_up(x, m):
    return (x + m - 1) // m * m


def _mlp_bn_relu_kernel(x_ref, w_ref, gamma_ref, beta_ref, o_ref,
                        sum_ref, sq_ref, scale_ref, shift_ref, *opt_scratch,
                        inv_m, cache_y):
    """Two-phase fused Linear + BatchNorm1d(training) + ReLU.

    x_ref:     (tm, C_in)         current row tile
    w_ref:     (C_in, C_out_pad)  torch weight transposed, lane-padded
    gamma_ref: (1, C_out_pad)     BN weight (0 in padded lanes)
    beta_ref:  (1, C_out_pad)     BN bias   (0 in padded lanes)
    o_ref:     (tm, C_out_pad)
    sum_ref / sq_ref:       (1, C_out_pad)  per-channel sum / sum-of-squares
    scale_ref / shift_ref:  (1, C_out_pad)  finalized BN affine
    opt_scratch[0]:         (num_tiles, tm, C_out_pad) cached f32 y (optional)
    """
    p = pl.program_id(0)   # phase: 0 = matmul + stats, 1 = finalize + apply
    t = pl.program_id(1)   # row tile

    @pl.when((p == 0) & (t == 0))
    def _init():
        sum_ref[...] = jnp.zeros_like(sum_ref)
        sq_ref[...] = jnp.zeros_like(sq_ref)

    @pl.when(p == 0)
    def _stats():
        y = jnp.dot(x_ref[...], w_ref[...], preferred_element_type=jnp.float32)
        if cache_y:
            opt_scratch[0][t] = y
        # Per-channel reductions on VPU/XLU sublane sums; keeps MXU slots for
        # the real matmul instead of degenerate (1 x tm) ones-reductions.
        sum_ref[...] += jnp.sum(y, axis=0, keepdims=True)
        sq_ref[...] += jnp.sum(y * y, axis=0, keepdims=True)

    @pl.when((p == 1) & (t == 0))
    def _finalize_stats():
        mean = sum_ref[...] * inv_m
        # One-pass variance in f32; clamp guards tiny negative rounding residue.
        var = jnp.maximum(sq_ref[...] * inv_m - mean * mean, 0.0)
        scale = gamma_ref[...] * jax.lax.rsqrt(var + BN_EPS)
        scale_ref[...] = scale
        shift_ref[...] = beta_ref[...] - mean * scale

    @pl.when(p == 1)
    def _apply():
        if cache_y:
            y = opt_scratch[0][t]
        else:
            y = jnp.dot(x_ref[...], w_ref[...],
                        preferred_element_type=jnp.float32)
        out = y * scale_ref[...] + shift_ref[...]
        o_ref[...] = jnp.maximum(out, 0.0).astype(o_ref.dtype)


@functools.partial(jax.jit, static_argnames=("block_m",))
def superglue_mlp_forward(x, weight, bias, bn_gamma, bn_beta, *, block_m=1024):
    """x: (B, N, C_in); weight: (C_out, C_in) torch-style; returns (B, N, C_out)."""
    del bias  # cancels exactly under training-mode BatchNorm (dead compute)

    b, n, c_in = x.shape
    c_out = weight.shape[0]
    m = b * n

    c_out_pad = _round_up(c_out, 128)
    num_tiles = max(1, pl.cdiv(m, block_m))
    tm = _round_up(pl.cdiv(m, num_tiles), 8)
    m_pad = tm * num_tiles

    x2d = x.reshape(m, c_in)
    if m_pad != m:
        x2d = jnp.pad(x2d, ((0, m_pad - m), (0, 0)))

    w_t = weight.T                                     # (C_in, C_out)
    g = bn_gamma
    be = bn_beta
    if c_out_pad != c_out:
        pad = c_out_pad - c_out
        w_t = jnp.pad(w_t, ((0, 0), (0, pad)))
        g = jnp.pad(g, (0, pad))
        be = jnp.pad(be, (0, pad))
    g2d = g.reshape(1, c_out_pad)
    be2d = be.reshape(1, c_out_pad)

    # --- Device-aware VMEM budget (v7x = 64 MiB, v5e/v6e = 128 MiB) --------
    try:
        info = pltpu.get_tpu_info()
        vmem_cap = int(getattr(info, "vmem_capacity_bytes", 64 << 20))
    except Exception:                                  # conservative fallback
        vmem_cap = 64 << 20
    budget = min(int(0.4 * vmem_cap), 48 << 20)

    f32b = 4
    x_tile_b = tm * c_in * f32b
    w_b = c_in * c_out_pad * f32b
    vec_b = 8 * c_out_pad * f32b            # (1, C) refs are sublane-padded to 8
    out_tile_b = tm * c_out_pad * f32b
    y_cache_b = m_pad * c_out_pad * f32b
    base_vmem = (2 * x_tile_b + 2 * w_b + 4 * vec_b    # double-buffered inputs
                 + 2 * out_tile_b                      # double-buffered output
                 + 4 * vec_b)                          # stats/scale/shift scratch
    # Cache y only when the full slab fits comfortably; else recompute in phase 1.
    cache_y = (base_vmem + y_cache_b) <= (budget - (2 << 20))

    total_vmem = base_vmem + (y_cache_b if cache_y else 0)
    vmem_limit = int(min(max(total_vmem * 5 // 4 + (2 << 20), 16 << 20), budget))

    kernel = functools.partial(_mlp_bn_relu_kernel, inv_m=1.0 / m,
                               cache_y=cache_y)

    if cache_y:
        # Phase 1 never touches x: pin its block at the last tile (no re-DMA).
        x_index_map = lambda p, t: ((1 - p) * t + p * (num_tiles - 1), 0)
    else:
        x_index_map = lambda p, t: (t, 0)

    scratch_shapes = [
        pltpu.VMEM((1, c_out_pad), jnp.float32),   # sum
        pltpu.VMEM((1, c_out_pad), jnp.float32),   # sum of squares
        pltpu.VMEM((1, c_out_pad), jnp.float32),   # scale
        pltpu.VMEM((1, c_out_pad), jnp.float32),   # shift
    ]
    if cache_y:
        scratch_shapes.append(
            pltpu.VMEM((num_tiles, tm, c_out_pad), jnp.float32))

    matmul_passes = 1 if cache_y else 2
    cost = pl.CostEstimate(
        flops=2 * matmul_passes * m_pad * c_in * c_out_pad,
        transcendentals=c_out_pad,
        bytes_accessed=(matmul_passes * m_pad * c_in + c_in * c_out_pad
                        + m_pad * c_out_pad) * f32b,
    )

    out2d = pl.pallas_call(
        kernel,
        out_shape=jax.ShapeDtypeStruct((m_pad, c_out_pad), x.dtype),
        grid=(2, num_tiles),
        in_specs=[
            pl.BlockSpec((tm, c_in), x_index_map),
            pl.BlockSpec((c_in, c_out_pad), lambda p, t: (0, 0)),
            pl.BlockSpec((1, c_out_pad), lambda p, t: (0, 0)),
            pl.BlockSpec((1, c_out_pad), lambda p, t: (0, 0)),
        ],
        # Phase 0 pins the (never-written) output block at index 0, so nothing
        # is flushed until phase 1 writes real tiles and the index advances.
        out_specs=pl.BlockSpec((tm, c_out_pad), lambda p, t: (t * p, 0)),
        scratch_shapes=scratch_shapes,
        compiler_params=pltpu.CompilerParams(
            dimension_semantics=("arbitrary", "arbitrary"),
            vmem_limit_bytes=vmem_limit),
        cost_estimate=cost,
    )(x2d, w_t, g2d, be2d)

    return out2d[:m, :c_out].reshape(b, n, c_out)


def _reference_forward(x, weight, bias, bn_gamma, bn_beta):
    """Pure-JAX reference mirroring the PyTorch module in training mode."""
    y = jnp.einsum("bnc,oc->bno", x, weight) + bias            # Linear
    mean = jnp.mean(y, axis=(0, 1), keepdims=True)             # BN batch stats
    var = jnp.mean((y - mean) ** 2, axis=(0, 1), keepdims=True)
    y = (y - mean) / jnp.sqrt(var + BN_EPS)
    y = y * bn_gamma + bn_beta
    return jnp.maximum(y, 0.0)                                  # ReLU


if __name__ == "__main__":
    # Small shapes consistent with the module: (batch, num_keypoints, in_channels)
    batch, seq, in_channels, out_channels = 2, 8, 32, 64

    key = jax.random.PRNGKey(0)
    k_x, k_w, k_b = jax.random.split(key, 3)

    x = jax.random.normal(k_x, (batch, seq, in_channels), dtype=jnp.float32)

    # nn.Linear(in_channels, out_channels): weight (out, in), bias (out,)
    bound = 1.0 / (in_channels ** 0.5)
    weight = jax.random.uniform(
        k_w, (out_channels, in_channels), minval=-bound, maxval=bound,
        dtype=jnp.float32)
    bias = jax.random.uniform(
        k_b, (out_channels,), minval=-bound, maxval=bound, dtype=jnp.float32)

    # nn.BatchNorm1d(out_channels) default init: weight=1, bias=0.
    bn_gamma = jnp.ones((out_channels,), dtype=jnp.float32)
    bn_beta = jnp.zeros((out_channels,), dtype=jnp.float32)

    out = superglue_mlp_forward(x, weight, bias, bn_gamma, bn_beta)
    out = jax.block_until_ready(out)

    ref = _reference_forward(x, weight, bias, bn_gamma, bn_beta)
    assert out.shape == (batch, seq, out_channels), out.shape
    assert jnp.allclose(out, ref, atol=1e-4, rtol=1e-4), (
        float(jnp.max(jnp.abs(out - ref))))

    print("KERNEL_OK")
</pallas_src>

<mosaic_0001>
module attributes {stable_mosaic.version = 11 : i64} {
  func.func @_mlp_bn_relu_kernel(%arg0: i32, %arg1: i32, %arg2: memref<16x32xf32, #tpu.memory_space<vmem>>, %arg3: memref<32x128xf32, #tpu.memory_space<vmem>>, %arg4: memref<1x128xf32, #tpu.memory_space<vmem>>, %arg5: memref<1x128xf32, #tpu.memory_space<vmem>>, %arg6: memref<16x128xf32, #tpu.memory_space<vmem>>, %arg7: memref<1x128xf32, #tpu.memory_space<vmem>>, %arg8: memref<1x128xf32, #tpu.memory_space<vmem>>, %arg9: memref<1x128xf32, #tpu.memory_space<vmem>>, %arg10: memref<1x128xf32, #tpu.memory_space<vmem>>, %arg11: memref<1x16x128xf32, #tpu.memory_space<vmem>>) attributes {dimension_semantics = [#tpu.dimension_semantics<arbitrary>, #tpu.dimension_semantics<arbitrary>], iteration_bounds = array<i64: 2, 1>, scalar_prefetch = 0 : i64, scratch_operands = 5 : i64, tpu.core_type = #tpu.core_type<tc>, window_params = [{transform_indices = @transform_0, window_bounds = array<i64: 16, 32>}, {pipeline_mode = #tpu.pipeline_mode<synchronous>, transform_indices = @transform_1, window_bounds = array<i64: 32, 128>}, {pipeline_mode = #tpu.pipeline_mode<synchronous>, transform_indices = @transform_2, window_bounds = array<i64: 1, 128>}, {pipeline_mode = #tpu.pipeline_mode<synchronous>, transform_indices = @transform_3, window_bounds = array<i64: 1, 128>}, {transform_indices = @transform_4, window_bounds = array<i64: 16, 128>}]} {
    %c0_i32 = arith.constant 0 : i32
    %0 = arith.cmpi eq, %arg0, %c0_i32 : i32
    %c0_i32_0 = arith.constant 0 : i32
    %1 = arith.cmpi eq, %arg1, %c0_i32_0 : i32
    %2 = arith.andi %0, %1 : i1
    %3 = arith.extui %2 : i1 to i32
    %c0_i32_1 = arith.constant 0 : i32
    %4 = arith.cmpi ne, %3, %c0_i32_1 : i32
    scf.if %4 {
      %cst = arith.constant 0.000000e+00 : f32
      %16 = vector.broadcast %cst : f32 to vector<1x128xf32>
      %c0 = arith.constant 0 : index
      %c0_8 = arith.constant 0 : index
      %17 = vector.load %arg7[%c0, %c0_8] : memref<1x128xf32, #tpu.memory_space<vmem>>, vector<1x128xf32>
      tpu.vector_store %arg7[%c0, %c0_8], %16 {strides = array<i32>} : memref<1x128xf32, #tpu.memory_space<vmem>>, vector<1x128xf32>,
      %cst_9 = arith.constant 0.000000e+00 : f32
      %18 = vector.broadcast %cst_9 : f32 to vector<1x128xf32>
      %c0_10 = arith.constant 0 : index
      %c0_11 = arith.constant 0 : index
      %19 = vector.load %arg8[%c0_10, %c0_11] : memref<1x128xf32, #tpu.memory_space<vmem>>, vector<1x128xf32>
      tpu.vector_store %arg8[%c0_10, %c0_11], %18 {strides = array<i32>} : memref<1x128xf32, #tpu.memory_space<vmem>>, vector<1x128xf32>,
    } else {
    }
    %c0_i32_2 = arith.constant 0 : i32
    %5 = arith.cmpi eq, %arg0, %c0_i32_2 : i32
    %6 = arith.extui %5 : i1 to i32
    %c0_i32_3 = arith.constant 0 : i32
    %7 = arith.cmpi ne, %6, %c0_i32_3 : i32
    scf.if %7 {
      %c0 = arith.constant 0 : index
      %c0_8 = arith.constant 0 : index
      %16 = vector.load %arg2[%c0, %c0_8] : memref<16x32xf32, #tpu.memory_space<vmem>>, vector<16x32xf32>
      %c0_9 = arith.constant 0 : index
      %c0_10 = arith.constant 0 : index
      %17 = vector.load %arg3[%c0_9, %c0_10] : memref<32x128xf32, #tpu.memory_space<vmem>>, vector<32x128xf32>
      %cst = arith.constant dense<0.000000e+00> : vector<16x128xf32>
      %18 = tpu.matmul %16, %17, %cst {dimension_numbers = #tpu.dot_dimension_numbers<[1], [0], [0], [1], [0, 0, 1, 1], [], []>} : vector<16x32xf32>, vector<32x128xf32>, vector<16x128xf32> -> vector<16x128xf32>
      %19 = arith.index_cast %arg1 : i32 to index
      %c0_11 = arith.constant 0 : index
      %c0_12 = arith.constant 0 : index
      %20 = vector.load %arg11[%19, %c0_11, %c0_12] : memref<1x16x128xf32, #tpu.memory_space<vmem>>, vector<1x16x128xf32>
      %21 = vector.shape_cast %20 : vector<1x16x128xf32> to vector<16x128xf32>
      %22 = vector.shape_cast %18 : vector<16x128xf32> to vector<1x16x128xf32>
      tpu.vector_store %arg11[%19, %c0_11, %c0_12], %22 {strides = array<i32>} : memref<1x16x128xf32, #tpu.memory_space<vmem>>, vector<1x16x128xf32>,
      %c0_13 = arith.constant 0 : index
      %c0_14 = arith.constant 0 : index
      %23 = vector.load %arg7[%c0_13, %c0_14] : memref<1x128xf32, #tpu.memory_space<vmem>>, vector<1x128xf32>
      %cst_15 = arith.constant dense<0.000000e+00> : vector<128xf32>
      %24 = vector.multi_reduction <add>, %18, %cst_15 [0] : vector<16x128xf32> to vector<128xf32>
      %25 = vector.shape_cast %24 : vector<128xf32> to vector<1x128xf32>
      %26 = arith.addf %23, %25 : vector<1x128xf32>
      %c0_16 = arith.constant 0 : index
      %c0_17 = arith.constant 0 : index
      %27 = vector.load %arg7[%c0_16, %c0_17] : memref<1x128xf32, #tpu.memory_space<vmem>>, vector<1x128xf32>
      tpu.vector_store %arg7[%c0_16, %c0_17], %26 {strides = array<i32>} : memref<1x128xf32, #tpu.memory_space<vmem>>, vector<1x128xf32>,
      %c0_18 = arith.constant 0 : index
      %c0_19 = arith.constant 0 : index
      %28 = vector.load %arg8[%c0_18, %c0_19] : memref<1x128xf32, #tpu.memory_space<vmem>>, vector<1x128xf32>
      %29 = arith.mulf %18, %18 : vector<16x128xf32>
      %cst_20 = arith.constant dense<0.000000e+00> : vector<128xf32>
      %30 = vector.multi_reduction <add>, %29, %cst_20 [0] : vector<16x128xf32> to vector<128xf32>
      %31 = vector.shape_cast %30 : vector<128xf32> to vector<1x128xf32>
      %32 = arith.addf %28, %31 : vector<1x128xf32>
      %c0_21 = arith.constant 0 : index
      %c0_22 = arith.constant 0 : index
      %33 = vector.load %arg8[%c0_21, %c0_22] : memref<1x128xf32, #tpu.memory_space<vmem>>, vector<1x128xf32>
      tpu.vector_store %arg8[%c0_21, %c0_22], %32 {strides = array<i32>} : memref<1x128xf32, #tpu.memory_space<vmem>>, vector<1x128xf32>,
    } else {
    }
    %c1_i32 = arith.constant 1 : i32
    %8 = arith.cmpi eq, %arg0, %c1_i32 : i32
    %c0_i32_4 = arith.constant 0 : i32
    %9 = arith.cmpi eq, %arg1, %c0_i32_4 : i32
    %10 = arith.andi %8, %9 : i1
    %11 = arith.extui %10 : i1 to i32
    %c0_i32_5 = arith.constant 0 : i32
    %12 = arith.cmpi ne, %11, %c0_i32_5 : i32
    scf.if %12 {
      %c0 = arith.constant 0 : index
      %c0_8 = arith.constant 0 : index
      %16 = vector.load %arg7[%c0, %c0_8] : memref<1x128xf32, #tpu.memory_space<vmem>>, vector<1x128xf32>
      %cst = arith.constant 6.250000e-02 : f32
      %17 = vector.broadcast %cst : f32 to vector<1x128xf32>
      %18 = arith.mulf %16, %17 : vector<1x128xf32>
      %c0_9 = arith.constant 0 : index
      %c0_10 = arith.constant 0 : index
      %19 = vector.load %arg8[%c0_9, %c0_10] : memref<1x128xf32, #tpu.memory_space<vmem>>, vector<1x128xf32>
      %cst_11 = arith.constant 6.250000e-02 : f32
      %20 = vector.broadcast %cst_11 : f32 to vector<1x128xf32>
      %21 = arith.mulf %19, %20 : vector<1x128xf32>
      %22 = arith.mulf %18, %18 : vector<1x128xf32>
      %23 = arith.subf %21, %22 : vector<1x128xf32>
      %cst_12 = arith.constant 0.000000e+00 : f32
      %24 = vector.broadcast %cst_12 : f32 to vector<1x128xf32>
      %25 = arith.maximumf %23, %24 : vector<1x128xf32>
      %c0_13 = arith.constant 0 : index
      %c0_14 = arith.constant 0 : index
      %26 = vector.load %arg4[%c0_13, %c0_14] : memref<1x128xf32, #tpu.memory_space<vmem>>, vector<1x128xf32>
      %cst_15 = arith.constant 9.99999974E-6 : f32
      %27 = vector.broadcast %cst_15 : f32 to vector<1x128xf32>
      %28 = arith.addf %25, %27 : vector<1x128xf32>
      %29 = math.rsqrt %28 : vector<1x128xf32>
      %30 = arith.mulf %26, %29 : vector<1x128xf32>
      %c0_16 = arith.constant 0 : index
      %c0_17 = arith.constant 0 : index
      %31 = vector.load %arg9[%c0_16, %c0_17] : memref<1x128xf32, #tpu.memory_space<vmem>>, vector<1x128xf32>
      tpu.vector_store %arg9[%c0_16, %c0_17], %30 {strides = array<i32>} : memref<1x128xf32, #tpu.memory_space<vmem>>, vector<1x128xf32>,
      %c0_18 = arith.constant 0 : index
      %c0_19 = arith.constant 0 : index
      %32 = vector.load %arg5[%c0_18, %c0_19] : memref<1x128xf32, #tpu.memory_space<vmem>>, vector<1x128xf32>
      %33 = arith.mulf %18, %30 : vector<1x128xf32>
      %34 = arith.subf %32, %33 : vector<1x128xf32>
      %c0_20 = arith.constant 0 : index
      %c0_21 = arith.constant 0 : index
      %35 = vector.load %arg10[%c0_20, %c0_21] : memref<1x128xf32, #tpu.memory_space<vmem>>, vector<1x128xf32>
      tpu.vector_store %arg10[%c0_20, %c0_21], %34 {strides = array<i32>} : memref<1x128xf32, #tpu.memory_space<vmem>>, vector<1x128xf32>,
    } else {
    }
    %c1_i32_6 = arith.constant 1 : i32
    %13 = arith.cmpi eq, %arg0, %c1_i32_6 : i32
    %14 = arith.extui %13 : i1 to i32
    %c0_i32_7 = arith.constant 0 : i32
    %15 = arith.cmpi ne, %14, %c0_i32_7 : i32
    scf.if %15 {
      %16 = arith.index_cast %arg1 : i32 to index
      %c0 = arith.constant 0 : index
      %c0_8 = arith.constant 0 : index
      %17 = vector.load %arg11[%16, %c0, %c0_8] : memref<1x16x128xf32, #tpu.memory_space<vmem>>, vector<1x16x128xf32>
      %18 = vector.shape_cast %17 : vector<1x16x128xf32> to vector<16x128xf32>
      %c0_9 = arith.constant 0 : index
      %c0_10 = arith.constant 0 : index
      %19 = vector.load %arg9[%c0_9, %c0_10] : memref<1x128xf32, #tpu.memory_space<vmem>>, vector<1x128xf32>
      %20 = vector.broadcast %19 : vector<1x128xf32> to vector<16x128xf32>
      %21 = arith.mulf %18, %20 : vector<16x128xf32>
      %c0_11 = arith.constant 0 : index
      %c0_12 = arith.constant 0 : index
      %22 = vector.load %arg10[%c0_11, %c0_12] : memref<1x128xf32, #tpu.memory_space<vmem>>, vector<1x128xf32>
      %23 = vector.broadcast %22 : vector<1x128xf32> to vector<16x128xf32>
      %24 = arith.addf %21, %23 : vector<16x128xf32>
      %cst = arith.constant 0.000000e+00 : f32
      %25 = vector.broadcast %cst : f32 to vector<16x128xf32>
      %26 = arith.maximumf %24, %25 : vector<16x128xf32>
      %c0_13 = arith.constant 0 : index
      %c0_14 = arith.constant 0 : index
      %27 = vector.load %arg6[%c0_13, %c0_14] : memref<16x128xf32, #tpu.memory_space<vmem>>, vector<16x128xf32>
      tpu.vector_store %arg6[%c0_13, %c0_14], %26 {strides = array<i32>} : memref<16x128xf32, #tpu.memory_space<vmem>>, vector<16x128xf32>,
    } else {
    }
    return
  }
  func.func @transform_0(%arg0: i32, %arg1: i32) -> (i32, i32) {
    %c1_i32 = arith.constant 1 : i32
    %0 = arith.subi %c1_i32, %arg0 : i32
    %1 = arith.muli %0, %arg1 : i32
    %c0_i32 = arith.constant 0 : i32
    %2 = arith.muli %arg0, %c0_i32 : i32
    %3 = arith.addi %1, %2 : i32
    %c0_i32_0 = arith.constant 0 : i32
    %c0_i32_1 = arith.constant 0 : i32
    return %3, %c0_i32_0 : i32, i32
  }
  func.func @transform_1(%arg0: i32, %arg1: i32) -> (i32, i32) {
    %c0_i32 = arith.constant 0 : i32
    %c0_i32_0 = arith.constant 0 : i32
    %c0_i32_1 = arith.constant 0 : i32
    return %c0_i32, %c0_i32_0 : i32, i32
  }
  func.func @transform_2(%arg0: i32, %arg1: i32) -> (i32, i32) {
    %c0_i32 = arith.constant 0 : i32
    %c0_i32_0 = arith.constant 0 : i32
    %c0_i32_1 = arith.constant 0 : i32
    return %c0_i32, %c0_i32_0 : i32, i32
  }
  func.func @transform_3(%arg0: i32, %arg1: i32) -> (i32, i32) {
    %c0_i32 = arith.constant 0 : i32
    %c0_i32_0 = arith.constant 0 : i32
    %c0_i32_1 = arith.constant 0 : i32
    return %c0_i32, %c0_i32_0 : i32, i32
  }
  func.func @transform_4(%arg0: i32, %arg1: i32) -> (i32, i32) {
    %0 = arith.muli %arg1, %arg0 : i32
    %c0_i32 = arith.constant 0 : i32
    %c0_i32_0 = arith.constant 0 : i32
    return %0, %c0_i32 : i32, i32
  }
}

</mosaic_0001>

<bundles_post_ra>
// kernel: superglue_mlp_forward.1
= control target key start
LH: loop header
LB: loop body
LE: loop exit
PB: predicated region body
PF: predicated region fallthrough
CT: control target
= control target key end

     0   :  { %s531_s15 = smov 0   ;;  %s533_s16 = smov 0   ;;  %s594_s0 = inlined_call_operand.vmem [shape: f32[16,32], index: 0, kind: input, shape index: {}]   ;;  %s595_s1 = inlined_call_operand.vmem [shape: f32[32,128], index: 1, kind: input, shape index: {}]   ;;  %s596_s2 = inlined_call_operand.vmem [shape: f32[1,128], index: 2, kind: input, shape index: {}]   ;;  %s597_s3 = inlined_call_operand.vmem [shape: f32[1,128], index: 3, kind: input, shape index: {}]   ;;  %s598_s4 = inlined_call_operand.vmem [shape: f32[16,128], index: 4, kind: output, shape index: {}]  }
   0x1   :  { %s535_s17 = smov 0  }
   0x2 LB: > { %s26_s18 = sadd.s32 1, %s499_s16  ;;  %p435_p0 = scmp.ge.s32.totalorder %s503_s17, 1  ;;  %s503_s17 = sphi %s535_s17, %s14_s17   ;;  %s499_s16 = sphi %s533_s16, %s600_s16   ;;  %s495_s15 = sphi %s531_s15, %s599_s15  }
   0x3   : > { %p28_p1 = scmp.ge.s32.totalorder %s26_s18, 2  ;;  %p185_p2 = scmp.lt.s32.totalorder %s503_s17, 3 }
   0x5   : > { %s602_s18 = smov (%p28_p1, %s26_s18), 0  ;;  %p186_p3 = pnand %p435_p0, %p185_p2 }
   0x6   : > { %p232_p4 = scmp.eq.s32.totalorder (!%p186_p3), %s495_s15, 0 }
   0x7   : > { %189 = sbr.rel (%p186_p3) target bundleno = 233 (0xe9), region = 36 }
   0xc   : > { %237 = sbr.rel (!%p232_p4) target bundleno = 17 (0x11), region = 40  ;;  %v505_v0 = vmov (%p232_p4), 0.0  }
   0xd   : > { %238 = vst [vmem:[#allocation2] sm:$0x1] (%p232_p4), %v505_v0 }
   0xe   : > { %239 = vst [vmem:[#allocation3] sm:$0x1] (%p232_p4), %v505_v0 }
  0x11 PF: > { %p437_p5 = scmp.ne.s32.totalorder %s495_s15, 0 }
  0x13   : > { %242 = sbr.rel (%p437_p5) target bundleno = 177 (0xb1), region = 44 }
  0x18   : > { %v248_v1 = vld [vmem:[%s595_s1 + $0x18] sm:$0xff]  ;;  %v247_v2 = vld [vmem:[%s595_s1 + $0x10] sm:$0xff]  ;;  %v246_v3 = vld [vmem:[%s595_s1 + $0x8] sm:$0xff]  ;;  %vm249_vm0 = vcmask 261120  }
  0x19   : > { %268 = vmatpush.msra.mxu0 %v248_v1  ;;  %448 = vmatpush.msra.mxu1 %v248_v1  ;;  %v245_v4 = vld [vmem:[%s595_s1] sm:$0xff]  ;;  %v244_v6 = vld [vmem:[%s594_s0 + $0x8] sm:$0xff] }
  0x1a   : > { %v243_v5 = vld [vmem:[%s594_s0] sm:$0xff] }
  0x1b   : > { %269 = vmatpush.msra.mxu0 %v247_v2  ;;  %449 = vmatpush.msra.mxu1 %v247_v2  ;;  %v283_v22 = vld [vmem:[#allocation2] sm:$0x1]  ;;  %v293_v25 = vld [vmem:[#allocation3] sm:$0x1] }
  0x1d   : > { %270 = vmatpush.msra.mxu0 %v246_v3  ;;  %450 = vmatpush.msra.mxu1 %v246_v3 }
  0x1f   : > { %271 = vmatpush.msra.mxu0 %v245_v4  ;;  %451 = vmatpush.msra.mxu1 %v245_v4 }
  0x20   : > { %438 = vmatmul.msk.f32.vlgmr.msra.gmra.mxu0 %vm249_vm0, %v243_v5  ;;  %439 = vmatmul.msk.f32.vlgmr.msra.gmra.mxu1 %vm249_vm0, %v244_v6 }
  0x9d   : > { %v273_v7 = vpop.f32.mrf.mxu0  ;;  %v276_v8 = vpop.f32.mrf.mxu1 }
  0x9e   : > { %281 = vst [vmem:[#allocation6] sm:$0xff] %v273_v7  ;;  %v294_v9 = vmul.f32 %v273_v7, %v273_v7  ;;  %v284_v10 = vadd.f32 %v276_v8, %v273_v7  ;;  %v295_v11 = vmul.f32 %v276_v8, %v276_v8 }
  0x9f   : > { %282 = vst [vmem:[#allocation6 + $0x8] sm:$0xff] %v276_v8 }
  0xa0   : > { %v285_v12 = vrot.slane %v284_v10, 4  ;;  %v296_v13 = vadd.f32 %v295_v11, %v294_v9 }
  0xa2   : > { %v286_v14 = vadd.f32 %v285_v12, %v284_v10  ;;  %v297_v15 = vrot.slane %v296_v13, 4 }
  0xa4   : > { %v287_v16 = vrot.slane %v286_v14, 2  ;;  %v298_v17 = vadd.f32 %v297_v15, %v296_v13 }
  0xa6   : > { %v288_v18 = vadd.f32 %v287_v16, %v286_v14  ;;  %v299_v19 = vrot.slane %v298_v17, 2 }
  0xa8   : > { %v289_v20 = vrot.slane %v288_v18, 1  ;;  %v300_v21 = vadd.f32 %v299_v19, %v298_v17 }
  0xaa   : > { %v290_v23 = vadd.f32 %v289_v20, %v288_v18  ;;  %v301_v24 = vrot.slane %v300_v21, 1 }
  0xac   : > { %v291_v26 = vadd.f32 %v290_v23, %v283_v22  ;;  %v302_v27 = vadd.f32 %v301_v24, %v300_v21 }
  0xae   : > { %292 = vst [vmem:[#allocation2] sm:$0x1] %v291_v26  ;;  %v303_v28 = vadd.f32 %v302_v27, %v293_v25 }
  0xb0   : > { %304 = vst [vmem:[#allocation3] sm:$0x1] %v303_v28 }
  0xb1 PF: > { %p305_p6 = scmp.eq.s32.totalorder %s495_s15, 1 }
  0xb2   : > { %v317_v42 = vld [vmem:[%s596_s2] sm:$0x1] (%p305_p6) }
  0xb3   : > { %309 = sbr.rel (!%p305_p6) target bundleno = 217 (0xd9), region = 48  ;;  %v331_v46 = vld [vmem:[%s597_s3] sm:$0x1] (%p305_p6) }
  0xb5   : > { %v310_v29 = vld [vmem:[#allocation2] sm:$0x1] (%p305_p6) }
  0xb6   : > { %v311_v31 = vmul.f32 (%p305_p6), 0.0625, %v310_v29 }
  0xb7   : > { %v312_v30 = vld [vmem:[#allocation3] sm:$0x1] (%p305_p6) }
  0xb8   : > { %v313_v32 = vmul.f32 0.0625, %v312_v30  ;;  %v314_v33 = vmul.f32 %v311_v31, %v311_v31 }
  0xba   : > { %v315_v34 = vsub.f32 %v313_v32, %v314_v33 }
  0xbc   : > { %v316_v35 = vmax.f32 %v315_v34, 0.0 }
  0xbe   : > { %v318_v36 = vadd.f32 1e-05, %v316_v35 }
  0xc0   : > { %477 = vrsqrt.f32 %v318_v36  ;;  %vm325_vm1 = vweird.f32 %v318_v36 }
  0xc6   : > { %v478_v37 = vpop.eup %477 }
  0xc7   : > { %v320_v38 = vmul.f32 %v478_v37, %v318_v36  ;;  %vm326_vm2 = vweird.f32 %v478_v37 }
  0xc8   : > { %vm327_vm3 = vmor %vm325_vm1, %vm326_vm2 }
  0xc9   : > { %v321_v39 = vmul.f32 %v478_v37, %v320_v38 }
  0xcb   : > { %v322_v40 = vmul.f32 0.5, %v321_v39 }
  0xcd   : > { %v323_v41 = vsub.f32 1.5, %v322_v40 }
  0xcf   : > { %v324_v43 = vmul.f32 %v478_v37, %v323_v41 }
  0xd1   : > { %v328_v44 = vsel %vm327_vm3, %v478_v37, %v324_v43 }
  0xd2   : > { %v329_v45 = vmul.f32 %v328_v44, %v317_v42 }
  0xd4   : > { %330 = vst [vmem:[#allocation4] sm:$0x1] %v329_v45  ;;  %v332_v47 = vmul.f32 %v329_v45, %v311_v31 }
  0xd6   : > { %v333_v48 = vsub.f32 %v331_v46, %v332_v47 }
  0xd8   : > { %334 = vst [vmem:[#allocation5] sm:$0x1] %v333_v48 }
  0xd9 PF: > { %p441_p7 = scmp.ne.s32.totalorder %s495_s15, 1 }
  0xdb   : > { %337 = sbr.rel (%p441_p7) target bundleno = 233 (0xe9), region = 52 }
  0xe0   : > { %v340_v49 = vld [vmem:[#allocation6] sm:$0xff]  ;;  %v479_v50 = vld [vmem:[#allocation4] ss:$0 sm:$0xff]  ;;  %v480_v51 = vld [vmem:[#allocation5] ss:$0 sm:$0xff] }
  0xe1   : > { %v341_v52 = vld [vmem:[#allocation6 + $0x8] sm:$0xff]  ;;  %v346_v53 = vmul.f32 %v479_v50, %v340_v49 }
  0xe2   : > { %v347_v54 = vmul.f32 %v479_v50, %v341_v52 }
  0xe3   : > { %v352_v55 = vadd.f32 %v480_v51, %v346_v53 }
  0xe4   : > { %v353_v56 = vadd.f32 %v480_v51, %v347_v54 }
  0xe5   : > { %v354_v57 = vmax.f32 %v352_v55, 0.0 }
  0xe6   : > { %v355_v58 = vmax.f32 %v353_v56, 0.0 }
  0xe7   : > { %356 = vst [vmem:[%s598_s4] sm:$0xff] %v354_v57 }
  0xe8   : > { %357 = vst [vmem:[%s598_s4 + $0x8] sm:$0xff] %v355_v58 }
  0xe9 PF: > { %s14_s17 = sadd.s32 1, %s503_s17   ;;  %s599_s15 = smov %s499_s16 }
  0xea   : > { %p11_p8 = scmp.ge.s32.totalorder %s14_s17, 4   ;;  %s600_s16 = smov %s602_s18 }
  0xec   :  { %13 = sbr.rel (!%p11_p8) target bundleno = 2 (0x2), region = 84 }

</bundles_post_ra>
